<compile_context>
chip_gen: v7x
topology: tpu7x:2x2x1
jax: 0.10.0
libtpu: 0.0.40
codegen_flags: <defaults>
</compile_context>

<pallas_src>
import functools
import math

import jax
import jax.numpy as jnp
from jax.experimental import pallas as pl
from jax.experimental.pallas import tpu as pltpu

_LANE = 128  # TPU lane width


def _gmf_kernel(x1_ref, x2_ref, w1_ref, b1_ref, w2_ref, b2_ref, o_ref, *,
                mxu_dtype, approx_gate):
    """One (batch-tile, O-tile): two MXU matmuls + gated blend (f32 epilogue)."""
    # Activations cast to the MXU input dtype; weights arrive pre-cast and
    # pre-transposed ([D, O_tile]) from the wrapper -> no per-iteration work
    # on the resident operands.
    x1 = x1_ref[...].astype(mxu_dtype)
    x2 = x2_ref[...].astype(mxu_dtype)

    # Canonical [M,K]x[K,N] contraction -> feeds the MXU directly (no XLU
    # transpose of the weight tile). f32 accumulation.
    h1 = jnp.dot(x1, w1_ref[...], preferred_element_type=jnp.float32)
    h1 = h1 + b1_ref[...]                       # bias kept in f32
    h2 = jnp.dot(x2, w2_ref[...], preferred_element_type=jnp.float32)
    h2 = h2 + b2_ref[...]

    s = h1 + h2
    # sigmoid(s) = 1 / (1 + exp(-s)): exp runs on the EUP slot; with
    # approx_gate=True the reciprocal moves there too (vrcp).
    gate = pl.reciprocal(1.0 + jnp.exp(-s), approx=approx_gate)
    # g*h1 + (1-g)*h2 == h2 + g*(h1 - h2): fewer VPU ops in the epilogue.
    o_ref[...] = (h2 + gate * (h1 - h2)).astype(o_ref.dtype)


def gated_multimodal_fusion(x1, x2, w1, b1, w2, b2, *,
                            block_b=512,
                            block_o=512,
                            compute_dtype=jnp.bfloat16,
                            approx_gate=False):
    """Gated multimodal fusion matching torch nn.Linear semantics.

    x1: [B, D1], x2: [B, D2], w1: [O, D1], b1: [O], w2: [O, D2], b2: [O]
    Returns [B, O] in x1.dtype. `compute_dtype` is the MXU input dtype
    (bf16 default; pass jnp.float32 for a full-precision validation path).
    """
    B, D1 = x1.shape
    B2, D2 = x2.shape
    O = w1.shape[0]
    assert B == B2
    assert w1.shape == (O, D1) and w2.shape == (O, D2)
    assert b1.shape == (O,) and b2.shape == (O,)

    out_dtype = x1.dtype

    # ---- Wrapper-side weight prep (one HBM pass; in production store weights
    # pre-transposed [D, O_pad] and pre-cast so this is a no-op). Output dim is
    # padded to a lane multiple (128) -> lane-dense stores + full MXU tiles;
    # padded columns are exactly zero and sliced off below.
    O_pad = ((O + _LANE - 1) // _LANE) * _LANE
    pad = O_pad - O
    w1t = jnp.pad(w1.T.astype(compute_dtype), ((0, 0), (0, pad)))
    w2t = jnp.pad(w2.T.astype(compute_dtype), ((0, 0), (0, pad)))
    b1_2d = jnp.pad(b1.astype(jnp.float32), (0, pad))[None, :]
    b2_2d = jnp.pad(b2.astype(jnp.float32), (0, pad))[None, :]
    # TODO(synk): for best MXU utilisation also keep D1/D2 padded to 128 (256
    # on v6e/v7x) in the stored weight/activation layout; padding activations
    # per call would add an HBM pass, so it is not done here.

    # ---- Tiling: batch streams (double-buffered); output dim streams only if
    # it does not fit one tile (weight-streaming mode, needed for large O on
    # v7x and for the single-batch-tile regime).
    TB = min(block_b, B)
    TO = min(block_o, O_pad)
    n_b = pl.cdiv(B, TB)
    n_o = pl.cdiv(O_pad, TO)
    weights_resident = (n_o == 1)

    def nbytes(shape, dtype):
        return math.prod(shape) * jnp.dtype(dtype).itemsize

    f32b = jnp.dtype(jnp.float32).itemsize
    # Conservative (double-buffered) VMEM budget + f32 epilogue intermediates.
    vmem_needed = (
        2 * (nbytes((TB, D1), x1.dtype) + nbytes((TB, D2), x2.dtype)
             + nbytes((TB, TO), out_dtype))
        + 2 * (nbytes((D1, TO), compute_dtype) + nbytes((D2, TO), compute_dtype)
               + 2 * nbytes((1, TO), jnp.float32))
        + 4 * TB * TO * f32b)                      # h1 / h2 / gate / blend
    try:
        vmem_cap = int(pltpu.get_tpu_info().vmem_capacity_bytes)
    except Exception:
        vmem_cap = 64 << 20                        # v7x per-TC worst case
    vmem_limit = int(min(vmem_needed + (4 << 20), vmem_cap - (8 << 20)))
    vmem_limit = max(vmem_limit, 32 << 20)

    # When O streams, weight slices are re-fetched once per batch tile.
    w_passes = 1 if weights_resident else n_b
    cost = pl.CostEstimate(
        flops=int(2 * B * (D1 + D2) * O_pad + 6 * B * O_pad),
        transcendentals=int(B * O_pad),
        bytes_accessed=int(
            nbytes((B, D1), x1.dtype) + nbytes((B, D2), x2.dtype)
            + w_passes * (nbytes((D1, O_pad), compute_dtype)
                          + nbytes((D2, O_pad), compute_dtype))
            + 2 * nbytes((1, O_pad), jnp.float32)
            + nbytes((B, O_pad), out_dtype)),
    )

    def _call(single_buffer_resident):
        # Resident (constant-index) operands can be single-buffered to halve
        # their VMEM footprint; streamed weight slices keep default buffering.
        res_kwargs = ({'pipeline_mode': pl.Buffered(1)}
                      if single_buffer_resident else {})
        w1_spec = pl.BlockSpec((D1, TO), lambda i, j: (0, j), **res_kwargs)
        w2_spec = pl.BlockSpec((D2, TO), lambda i, j: (0, j), **res_kwargs)
        b_spec = pl.BlockSpec((1, TO), lambda i, j: (0, j), **res_kwargs)
        return pl.pallas_call(
            functools.partial(_gmf_kernel, mxu_dtype=compute_dtype,
                              approx_gate=approx_gate),
            out_shape=jax.ShapeDtypeStruct((B, O_pad), out_dtype),
            grid_spec=pltpu.PrefetchScalarGridSpec(
                num_scalar_prefetch=0,
                grid=(n_b, n_o),
                in_specs=[
                    pl.BlockSpec((TB, D1), lambda i, j: (i, 0)),   # x1 tile
                    pl.BlockSpec((TB, D2), lambda i, j: (i, 0)),   # x2 tile
                    w1_spec,                                       # W1^T slice
                    b_spec,                                        # b1 slice
                    w2_spec,                                       # W2^T slice
                    b_spec,                                        # b2 slice
                ],
                out_specs=pl.BlockSpec((TB, TO), lambda i, j: (i, j)),
            ),
            compiler_params=pltpu.CompilerParams(
                # Every (batch, O) tile is independent -> both axes parallel
                # (v7x 2-TC sharding; neutral on single-TC v5e/v6e). Note: with
                # the batch axis parallel each TC holds its own resident weight
                # copy; the O axis gives it disjoint weight slices instead.
                dimension_semantics=("parallel", "parallel"),
                vmem_limit_bytes=vmem_limit,
            ),
            cost_estimate=cost,
        )(x1, x2, w1t, b1_2d, w2t, b2_2d)

    if weights_resident:
        try:
            out = _call(True)
        except Exception:
            # Fallback for environments without BlockSpec pipeline_mode /
            # single-buffering support; functionally identical.
            out = _call(False)
    else:
        out = _call(False)

    return out[:, :O] if O_pad != O else out


def _reference(x1, x2, w1, b1, w2, b2):
    h1 = x1 @ w1.T + b1
    h2 = x2 @ w2.T + b2
    g = jax.nn.sigmoid(h1 + h2)
    return g * h1 + (1.0 - g) * h2


def _bf16_emulated_reference(x1, x2, w1, b1, w2, b2):
    # Same math as the kernel's bf16 path: bf16-rounded MXU inputs, f32 acc.
    r = lambda a: a.astype(jnp.bfloat16).astype(jnp.float32)
    h1 = r(x1) @ r(w1).T + b1
    h2 = r(x2) @ r(w2).T + b2
    g = jax.nn.sigmoid(h1 + h2)
    return g * h1 + (1.0 - g) * h2


def _make_inputs(key, B, D1, D2, O):
    ks = jax.random.split(key, 6)
    x1 = jax.random.normal(ks[0], (B, D1), dtype=jnp.float32)
    x2 = jax.random.normal(ks[1], (B, D2), dtype=jnp.float32)
    lim1, lim2 = 1.0 / D1 ** 0.5, 1.0 / D2 ** 0.5
    w1 = jax.random.uniform(ks[2], (O, D1), minval=-lim1, maxval=lim1,
                            dtype=jnp.float32)
    b1 = jax.random.uniform(ks[3], (O,), minval=-lim1, maxval=lim1,
                            dtype=jnp.float32)
    w2 = jax.random.uniform(ks[4], (O, D2), minval=-lim2, maxval=lim2,
                            dtype=jnp.float32)
    b2 = jax.random.uniform(ks[5], (O,), minval=-lim2, maxval=lim2,
                            dtype=jnp.float32)
    return x1, x2, w1, b1, w2, b2


if __name__ == "__main__":
    # ---- Case 1: small module-consistent shapes; resident-weight path. ----
    B, D1, D2, O = 2, 32, 48, 64
    x1, x2, w1, b1, w2, b2 = _make_inputs(jax.random.PRNGKey(0), B, D1, D2, O)
    ref_f32 = _reference(x1, x2, w1, b1, w2, b2)

    # Full-precision MXU path: validates kernel plumbing / semantics.
    out_f32 = jax.block_until_ready(
        gated_multimodal_fusion(x1, x2, w1, b1, w2, b2,
                                compute_dtype=jnp.float32))
    assert out_f32.shape == (B, O)
    assert jnp.allclose(out_f32, ref_f32, atol=1e-3, rtol=1e-3), \
        "f32 path mismatch vs reference"

    # Performance path: bf16 MXU inputs, f32 accumulation + epilogue.
    out_bf16 = jax.block_until_ready(
        gated_multimodal_fusion(x1, x2, w1, b1, w2, b2,
                                compute_dtype=jnp.bfloat16))
    assert out_bf16.shape == (B, O)
    ref_bf16 = _bf16_emulated_reference(x1, x2, w1, b1, w2, b2)
    assert jnp.allclose(out_bf16, ref_bf16, atol=2e-3, rtol=2e-3), \
        "bf16 path mismatch vs bf16-emulated reference"
    assert jnp.allclose(out_bf16, ref_f32, atol=1e-1, rtol=1e-1), \
        "bf16 path too far from f32 reference"

    # ---- Case 2: multi-tile grid (batch tiles + output-dim weight streaming,
    # partial last blocks on both axes). ----
    B, D1, D2, O = 20, 128, 256, 384
    x1, x2, w1, b1, w2, b2 = _make_inputs(jax.random.PRNGKey(1), B, D1, D2, O)
    ref2 = _reference(x1, x2, w1, b1, w2, b2)
    out2 = jax.block_until_ready(
        gated_multimodal_fusion(x1, x2, w1, b1, w2, b2,
                                block_b=8, block_o=256,
                                compute_dtype=jnp.float32))
    assert out2.shape == (B, O)
    assert jnp.allclose(out2, ref2, atol=1e-3, rtol=1e-3), \
        "tiled (batch + O-streaming) path mismatch vs reference"

    print("KERNEL_OK")
</pallas_src>

<mosaic_0001>
module attributes {stable_mosaic.version = 11 : i64} {
  func.func @_gmf_kernel(%arg0: i32, %arg1: i32, %arg2: memref<2x32xf32, #tpu.memory_space<vmem>>, %arg3: memref<2x48xf32, #tpu.memory_space<vmem>>, %arg4: memref<32x128xf32, #tpu.memory_space<vmem>>, %arg5: memref<1x128xf32, #tpu.memory_space<vmem>>, %arg6: memref<48x128xf32, #tpu.memory_space<vmem>>, %arg7: memref<1x128xf32, #tpu.memory_space<vmem>>, %arg8: memref<2x128xf32, #tpu.memory_space<vmem>>) attributes {dimension_semantics = [#tpu.dimension_semantics<parallel>, #tpu.dimension_semantics<parallel>], iteration_bounds = array<i64: 1, 1>, scalar_prefetch = 0 : i64, scratch_operands = 0 : i64, tpu.core_type = #tpu.core_type<tc>, window_params = [{transform_indices = @transform_0, window_bounds = array<i64: 2, 32>}, {transform_indices = @transform_1, window_bounds = array<i64: 2, 48>}, {pipeline_mode = #tpu.pipeline_mode<synchronous>, transform_indices = @transform_2, window_bounds = array<i64: 32, 128>}, {pipeline_mode = #tpu.pipeline_mode<synchronous>, transform_indices = @transform_3, window_bounds = array<i64: 1, 128>}, {pipeline_mode = #tpu.pipeline_mode<synchronous>, transform_indices = @transform_4, window_bounds = array<i64: 48, 128>}, {pipeline_mode = #tpu.pipeline_mode<synchronous>, transform_indices = @transform_5, window_bounds = array<i64: 1, 128>}, {transform_indices = @transform_6, window_bounds = array<i64: 2, 128>}]} {
    %c0 = arith.constant 0 : index
    %c0_0 = arith.constant 0 : index
    %0 = vector.load %arg2[%c0, %c0_0] : memref<2x32xf32, #tpu.memory_space<vmem>>, vector<2x32xf32>
    %c0_1 = arith.constant 0 : index
    %c0_2 = arith.constant 0 : index
    %1 = vector.load %arg3[%c0_1, %c0_2] : memref<2x48xf32, #tpu.memory_space<vmem>>, vector<2x48xf32>
    %c0_3 = arith.constant 0 : index
    %c0_4 = arith.constant 0 : index
    %2 = vector.load %arg4[%c0_3, %c0_4] : memref<32x128xf32, #tpu.memory_space<vmem>>, vector<32x128xf32>
    %cst = arith.constant dense<0.000000e+00> : vector<2x128xf32>
    %3 = tpu.matmul %0, %2, %cst {dimension_numbers = #tpu.dot_dimension_numbers<[1], [0], [0], [1], [0, 0, 1, 1], [], []>} : vector<2x32xf32>, vector<32x128xf32>, vector<2x128xf32> -> vector<2x128xf32>
    %c0_5 = arith.constant 0 : index
    %c0_6 = arith.constant 0 : index
    %4 = vector.load %arg5[%c0_5, %c0_6] : memref<1x128xf32, #tpu.memory_space<vmem>>, vector<1x128xf32>
    %5 = vector.broadcast %4 : vector<1x128xf32> to vector<2x128xf32>
    %6 = arith.addf %3, %5 : vector<2x128xf32>
    %c0_7 = arith.constant 0 : index
    %c0_8 = arith.constant 0 : index
    %7 = vector.load %arg6[%c0_7, %c0_8] : memref<48x128xf32, #tpu.memory_space<vmem>>, vector<48x128xf32>
    %cst_9 = arith.constant dense<0.000000e+00> : vector<2x128xf32>
    %8 = tpu.matmul %1, %7, %cst_9 {dimension_numbers = #tpu.dot_dimension_numbers<[1], [0], [0], [1], [0, 0, 1, 1], [], []>} : vector<2x48xf32>, vector<48x128xf32>, vector<2x128xf32> -> vector<2x128xf32>
    %c0_10 = arith.constant 0 : index
    %c0_11 = arith.constant 0 : index
    %9 = vector.load %arg7[%c0_10, %c0_11] : memref<1x128xf32, #tpu.memory_space<vmem>>, vector<1x128xf32>
    %10 = vector.broadcast %9 : vector<1x128xf32> to vector<2x128xf32>
    %11 = arith.addf %8, %10 : vector<2x128xf32>
    %12 = arith.addf %6, %11 : vector<2x128xf32>
    %cst_12 = arith.constant 0.000000e+00 : f32
    %13 = vector.broadcast %cst_12 : f32 to vector<2x128xf32>
    %14 = arith.subf %13, %12 : vector<2x128xf32>
    %15 = math.exp %14 : vector<2x128xf32>
    %cst_13 = arith.constant 1.000000e+00 : f32
    %16 = vector.broadcast %cst_13 : f32 to vector<2x128xf32>
    %17 = arith.addf %16, %15 : vector<2x128xf32>
    %18 = tpu.reciprocal %17 : vector<2x128xf32> -> vector<2x128xf32>
    %19 = arith.subf %6, %11 : vector<2x128xf32>
    %20 = arith.mulf %18, %19 : vector<2x128xf32>
    %21 = arith.addf %11, %20 : vector<2x128xf32>
    %c0_14 = arith.constant 0 : index
    %c0_15 = arith.constant 0 : index
    %22 = vector.load %arg8[%c0_14, %c0_15] : memref<2x128xf32, #tpu.memory_space<vmem>>, vector<2x128xf32>
    tpu.vector_store %arg8[%c0_14, %c0_15], %21 {strides = array<i32>} : memref<2x128xf32, #tpu.memory_space<vmem>>, vector<2x128xf32>,
    return
  }
  func.func @transform_0(%arg0: i32, %arg1: i32) -> (i32, i32) {
    %c0_i32 = arith.constant 0 : i32
    %c0_i32_0 = arith.constant 0 : i32
    return %arg0, %c0_i32 : i32, i32
  }
  func.func @transform_1(%arg0: i32, %arg1: i32) -> (i32, i32) {
    %c0_i32 = arith.constant 0 : i32
    %c0_i32_0 = arith.constant 0 : i32
    return %arg0, %c0_i32 : i32, i32
  }
  func.func @transform_2(%arg0: i32, %arg1: i32) -> (i32, i32) {
    %c0_i32 = arith.constant 0 : i32
    %c0_i32_0 = arith.constant 0 : i32
    return %c0_i32, %arg1 : i32, i32
  }
  func.func @transform_3(%arg0: i32, %arg1: i32) -> (i32, i32) {
    %c0_i32 = arith.constant 0 : i32
    %c0_i32_0 = arith.constant 0 : i32
    return %c0_i32, %arg1 : i32, i32
  }
  func.func @transform_4(%arg0: i32, %arg1: i32) -> (i32, i32) {
    %c0_i32 = arith.constant 0 : i32
    %c0_i32_0 = arith.constant 0 : i32
    return %c0_i32, %arg1 : i32, i32
  }
  func.func @transform_5(%arg0: i32, %arg1: i32) -> (i32, i32) {
    %c0_i32 = arith.constant 0 : i32
    %c0_i32_0 = arith.constant 0 : i32
    return %c0_i32, %arg1 : i32, i32
  }
  func.func @transform_6(%arg0: i32, %arg1: i32) -> (i32, i32) {
    %c0_i32 = arith.constant 0 : i32
    return %arg0, %arg1 : i32, i32
  }
}

module attributes {stable_mosaic.version = 11 : i64} {
  func.func @_gmf_kernel(%arg0: i32, %arg1: i32, %arg2: memref<2x32xf32, #tpu.memory_space<vmem>>, %arg3: memref<2x48xf32, #tpu.memory_space<vmem>>, %arg4: memref<32x128xf32, #tpu.memory_space<vmem>>, %arg5: memref<1x128xf32, #tpu.memory_space<vmem>>, %arg6: memref<48x128xf32, #tpu.memory_space<vmem>>, %arg7: memref<1x128xf32, #tpu.memory_space<vmem>>, %arg8: memref<2x128xf32, #tpu.memory_space<vmem>>) attributes {dimension_semantics = [#tpu.dimension_semantics<parallel>, #tpu.dimension_semantics<parallel>], iteration_bounds = array<i64: 1, 1>, scalar_prefetch = 0 : i64, scratch_operands = 0 : i64, tpu.core_type = #tpu.core_type<tc>, window_params = [{transform_indices = @transform_0, window_bounds = array<i64: 2, 32>}, {transform_indices = @transform_1, window_bounds = array<i64: 2, 48>}, {transform_indices = @transform_2, window_bounds = array<i64: 32, 128>}, {transform_indices = @transform_3, window_bounds = array<i64: 1, 128>}, {transform_indices = @transform_4, window_bounds = array<i64: 48, 128>}, {transform_indices = @transform_5, window_bounds = array<i64: 1, 128>}, {transform_indices = @transform_6, window_bounds = array<i64: 2, 128>}]} {
    %c0 = arith.constant 0 : index
    %c0_0 = arith.constant 0 : index
    %0 = vector.load %arg2[%c0, %c0_0] : memref<2x32xf32, #tpu.memory_space<vmem>>, vector<2x32xf32>
    %c0_1 = arith.constant 0 : index
    %c0_2 = arith.constant 0 : index
    %1 = vector.load %arg3[%c0_1, %c0_2] : memref<2x48xf32, #tpu.memory_space<vmem>>, vector<2x48xf32>
    %c0_3 = arith.constant 0 : index
    %c0_4 = arith.constant 0 : index
    %2 = vector.load %arg4[%c0_3, %c0_4] : memref<32x128xf32, #tpu.memory_space<vmem>>, vector<32x128xf32>
    %cst = arith.constant dense<0.000000e+00> : vector<2x128xf32>
    %3 = tpu.matmul %0, %2, %cst {dimension_numbers = #tpu.dot_dimension_numbers<[1], [0], [0], [1], [0, 0, 1, 1], [], []>} : vector<2x32xf32>, vector<32x128xf32>, vector<2x128xf32> -> vector<2x128xf32>
    %c0_5 = arith.constant 0 : index
    %c0_6 = arith.constant 0 : index
    %4 = vector.load %arg5[%c0_5, %c0_6] : memref<1x128xf32, #tpu.memory_space<vmem>>, vector<1x128xf32>
    %5 = vector.broadcast %4 : vector<1x128xf32> to vector<2x128xf32>
    %6 = arith.addf %3, %5 : vector<2x128xf32>
    %c0_7 = arith.constant 0 : index
    %c0_8 = arith.constant 0 : index
    %7 = vector.load %arg6[%c0_7, %c0_8] : memref<48x128xf32, #tpu.memory_space<vmem>>, vector<48x128xf32>
    %cst_9 = arith.constant dense<0.000000e+00> : vector<2x128xf32>
    %8 = tpu.matmul %1, %7, %cst_9 {dimension_numbers = #tpu.dot_dimension_numbers<[1], [0], [0], [1], [0, 0, 1, 1], [], []>} : vector<2x48xf32>, vector<48x128xf32>, vector<2x128xf32> -> vector<2x128xf32>
    %c0_10 = arith.constant 0 : index
    %c0_11 = arith.constant 0 : index
    %9 = vector.load %arg7[%c0_10, %c0_11] : memref<1x128xf32, #tpu.memory_space<vmem>>, vector<1x128xf32>
    %10 = vector.broadcast %9 : vector<1x128xf32> to vector<2x128xf32>
    %11 = arith.addf %8, %10 : vector<2x128xf32>
    %12 = arith.addf %6, %11 : vector<2x128xf32>
    %cst_12 = arith.constant 0.000000e+00 : f32
    %13 = vector.broadcast %cst_12 : f32 to vector<2x128xf32>
    %14 = arith.subf %13, %12 : vector<2x128xf32>
    %15 = math.exp %14 : vector<2x128xf32>
    %cst_13 = arith.constant 1.000000e+00 : f32
    %16 = vector.broadcast %cst_13 : f32 to vector<2x128xf32>
    %17 = arith.addf %16, %15 : vector<2x128xf32>
    %18 = tpu.reciprocal %17 : vector<2x128xf32> -> vector<2x128xf32>
    %19 = arith.subf %6, %11 : vector<2x128xf32>
    %20 = arith.mulf %18, %19 : vector<2x128xf32>
    %21 = arith.addf %11, %20 : vector<2x128xf32>
    %c0_14 = arith.constant 0 : index
    %c0_15 = arith.constant 0 : index
    %22 = vector.load %arg8[%c0_14, %c0_15] : memref<2x128xf32, #tpu.memory_space<vmem>>, vector<2x128xf32>
    tpu.vector_store %arg8[%c0_14, %c0_15], %21 {strides = array<i32>} : memref<2x128xf32, #tpu.memory_space<vmem>>, vector<2x128xf32>,
    return
  }
  func.func @transform_0(%arg0: i32, %arg1: i32) -> (i32, i32) {
    %c0_i32 = arith.constant 0 : i32
    %c0_i32_0 = arith.constant 0 : i32
    return %arg0, %c0_i32 : i32, i32
  }
  func.func @transform_1(%arg0: i32, %arg1: i32) -> (i32, i32) {
    %c0_i32 = arith.constant 0 : i32
    %c0_i32_0 = arith.constant 0 : i32
    return %arg0, %c0_i32 : i32, i32
  }
  func.func @transform_2(%arg0: i32, %arg1: i32) -> (i32, i32) {
    %c0_i32 = arith.constant 0 : i32
    %c0_i32_0 = arith.constant 0 : i32
    return %c0_i32, %arg1 : i32, i32
  }
  func.func @transform_3(%arg0: i32, %arg1: i32) -> (i32, i32) {
    %c0_i32 = arith.constant 0 : i32
    %c0_i32_0 = arith.constant 0 : i32
    return %c0_i32, %arg1 : i32, i32
  }
  func.func @transform_4(%arg0: i32, %arg1: i32) -> (i32, i32) {
    %c0_i32 = arith.constant 0 : i32
    %c0_i32_0 = arith.constant 0 : i32
    return %c0_i32, %arg1 : i32, i32
  }
  func.func @transform_5(%arg0: i32, %arg1: i32) -> (i32, i32) {
    %c0_i32 = arith.constant 0 : i32
    %c0_i32_0 = arith.constant 0 : i32
    return %c0_i32, %arg1 : i32, i32
  }
  func.func @transform_6(%arg0: i32, %arg1: i32) -> (i32, i32) {
    %c0_i32 = arith.constant 0 : i32
    return %arg0, %arg1 : i32, i32
  }
}

</mosaic_0001>

<bundles_post_ra>
// kernel: tpu_custom_call.1
= control target key start
LH: loop header
LB: loop body
LE: loop exit
PB: predicated region body
PF: predicated region fallthrough
CT: control target
= control target key end

     0   :  { %11 = vsyncpa [#allocation3], 0  ;;  %s534_s0 = inlined_call_operand.hbm [shape: f32[2,32], index: 0, kind: input, shape index: {}]   ;;  %s535_s1 = inlined_call_operand.vmem [shape: f32[2,48], index: 1, kind: input, shape index: {}]   ;;  %s536_s2 = inlined_call_operand.hbm [shape: f32[32,128], index: 2, kind: input, shape index: {}]   ;;  %s537_s3 = inlined_call_operand.vmem [shape: f32[1,128], index: 3, kind: input, shape index: {}]   ;;  %s538_s4 = inlined_call_operand.hbm [shape: f32[48,128], index: 4, kind: input, shape index: {}]   ;;  %s539_s5 = inlined_call_operand.vmem [shape: f32[1,128], index: 5, kind: input, shape index: {}]   ;;  %s540_s6 = inlined_call_operand.hbm [shape: f32[2,128], index: 6, kind: output, shape index: {}]  }
   0x1   :  { %12 = vsyncpa [#allocation6], 0 }
   0x2   :  { %13 = vsyncpa [#allocation4], 0  ;;  %s427_s21 = smov [#allocation5]   ;;  %s333_s25 = scalar_lea.hbm %s536_s2, 512 }
   0x3   :  { %s31_s22 = sshll.u32 %s427_s21, 4  ;;  %p334_p0 = scmp.ne.s32.totalorder %s536_s2, %s333_s25  ;;  %s32_s22 = int_to_ptr.vmem [resolvable:$true] %s31_s22 }
   0x4   :  { %p337_p1 = scmp.lt.u32.totalorder %s333_s25, %s536_s2 }
   0x6   :  { %p339_p2 = pnand %p337_p1, %p334_p0 }
   0x8   :  { %342 = shalt.err (!%p339_p2)
}
   0x9   :  { %s343_s30 = scalar_lea.vmem %s32_s22, 512  ;;  %p348_p4 = scmp.lt.s32.totalorder %s32_s22, %s32_s22 }
   0xa   :  { %p344_p3 = scmp.ne.s32.totalorder %s32_s22, %s343_s30  ;;  %p349_p5 = scmp.lt.s32.totalorder %s343_s30, %s343_s30 }
   0xc   :  { %p350_p6 = por %p349_p5, %p348_p4 }
   0xe   :  { %p351_p7 = pnand %p350_p6, %p344_p3 }
  0x10   :  { %354 = shalt.err (!%p351_p7)
}
  0x11   :  { %s428_s7 = smov 128   ;;  %s429_s8 = smov 8  }
  0x12   :  { %37 = dma.hbm_to_vmem [thread:$0]  %s536_s2, 512, %s32_s22, [#allocation6], %s428_s7, %s428_s7, %s429_s8  }
  0x13   :  { %s430_s11 = smov [#allocation2]   ;;  %s431_s13 = smov [#allocation7]  }
  0x14   :  { %s20_s12 = sshll.u32 %s430_s11, 4  ;;  %s45_s14 = sshll.u32 %s431_s13, 4  ;;  %s21_s12 = int_to_ptr.vmem [resolvable:$true] %s20_s12  ;;  %s46_s14 = int_to_ptr.vmem [resolvable:$true] %s45_s14 }
  0x15   :  { %s355_s17 = scalar_lea.hbm %s534_s0, 32 }
  0x16   :  { %p356_p8 = scmp.ne.s32.totalorder %s534_s0, %s355_s17  ;;  %p359_p9 = scmp.lt.u32.totalorder %s355_s17, %s534_s0 }
  0x18   :  { %p361_p10 = pnand %p359_p9, %p356_p8 }
  0x1a   :  { %364 = shalt.err (!%p361_p10)
}
  0x1b   :  { %s365_s2 = scalar_lea.vmem %s21_s12, 32  ;;  %p370_p12 = scmp.lt.s32.totalorder %s21_s12, %s21_s12 }
  0x1c   :  { %p366_p11 = scmp.ne.s32.totalorder %s21_s12, %s365_s2  ;;  %p371_p13 = scmp.lt.s32.totalorder %s365_s2, %s365_s2 }
  0x1e   :  { %p372_p0 = por %p371_p13, %p370_p12 }
  0x20   :  { %p373_p1 = pnand %p372_p0, %p366_p11 }
  0x22   :  { %376 = shalt.err (!%p373_p1)
}
  0x23   :  { %23 = dma.hbm_to_vmem [thread:$0]  %s534_s0, 32, %s21_s12, [#allocation3]  }
  0x24   :  { %s377_s26 = scalar_lea.hbm %s538_s4, 768 }
  0x25   :  { %p378_p2 = scmp.ne.s32.totalorder %s538_s4, %s377_s26  ;;  %p381_p3 = scmp.lt.u32.totalorder %s377_s26, %s538_s4 }
  0x27   :  { %p383_p4 = pnand %p381_p3, %p378_p2 }
  0x29   :  { %386 = shalt.err (!%p383_p4)
}
  0x2a   :  { %s387_s9 = scalar_lea.vmem %s46_s14, 768  ;;  %p392_p6 = scmp.lt.s32.totalorder %s46_s14, %s46_s14 }
  0x2b   :  { %p388_p5 = scmp.ne.s32.totalorder %s46_s14, %s387_s9  ;;  %p393_p7 = scmp.lt.s32.totalorder %s387_s9, %s387_s9 }
  0x2d   :  { %p394_p8 = por %p393_p7, %p392_p6 }
  0x2f   :  { %p395_p9 = pnand %p394_p8, %p388_p5 }
  0x31   :  { %398 = shalt.err (!%p395_p9)
}
  0x32   :  { %51 = dma.hbm_to_vmem [thread:$0]  %s538_s4, 768, %s46_s14, [#allocation6], %s428_s7, %s428_s7, %s429_s8  }
  0x33   :  { %421 = dma.done.wait [#allocation3], 32  }
  0x34   :  { %422 = vsyncadd [#allocation3], 4294967264 }
  0x35   :  { %423 = dma.done.wait [#allocation6], 1280  }
  0x36   :  { %424 = vsyncadd [#allocation6], 4294966016  ;;  %v432_v0 = vmov 0.0|0.0   ;;  %vm433_vm0 = vmmov 0   ;;  %v434_v1 = vmov 0.0   ;;  %v150_v2 = vld [vmem:[#allocation7] sm:$0xff] }
  0x37   :  { %311 = vmatprep.subr.bf16.mxu1 %v432_v0  ;;  %305 = vmatprep.subr.bf16.mxu0 %v432_v0  ;;  %v151_v3 = vld [vmem:[#allocation7 + $0x8] sm:$0xff]  ;;  %v65_v4 = vld [vmem:[#allocation5] sm:$0xff]  ;;  %v152_v7 = vld [vmem:[#allocation7 + $0x10] sm:$0xff]  ;;  %vm76_vm1 = vcmask 261120   ;;  %vm163_vm2 = vcmask 392192  }
  0x38   :  { %287 = vmatprep.mubr.msk.f32.mxu0 %vm433_vm0, %v434_v1  ;;  %302 = vmatprep.mubr.msk.f32.mxu1 %vm433_vm0, %v434_v1  ;;  %v312_v5 = vpack.c.bf16 %v151_v3, %v150_v2  ;;  %v66_v6 = vld [vmem:[#allocation5 + $0x8] sm:$0xff]  ;;  %v153_v8 = vld [vmem:[#allocation7 + $0x18] sm:$0xff]  ;;  %v67_v10 = vld [vmem:[#allocation5 + $0x10] sm:$0xff] }
  0x39   :  { %v306_v9 = vpack.c.bf16 %v66_v6, %v65_v4  ;;  %v68_v11 = vld [vmem:[#allocation5 + $0x18] sm:$0xff]  ;;  %v315_v12 = vpack.c.bf16 %v153_v8, %v152_v7  ;;  %v154_v14 = vld [vmem:[#allocation7 + $0x20] sm:$0xff]  ;;  %v155_v15 = vld [vmem:[#allocation7 + $0x28] sm:$0xff] }
  0x3a   :  { %313 = vmatpush3.bf16.msra.mxu1 %v312_v5  ;;  %v309_v13 = vpack.c.bf16 %v68_v11, %v67_v10  ;;  %v318_v16 = vpack.c.bf16 %v155_v15, %v154_v14  ;;  %v63_v17 = vld [vmem:[#allocation2] sm:$0x3] }
  0x3b   :  { %307 = vmatpush3.bf16.msra.mxu0 %v306_v9  ;;  %314 = vmatprep.subr.bf16.mxu1 %v432_v0  ;;  %v64_v18 = vld [vmem:[%s535_s1] sm:$0x3]  ;;  %s435_s1 = smov [#allocation8]  }
  0x3c   :  { %308 = vmatprep.subr.bf16.mxu0 %v432_v0  ;;  %v263_v19 = vld [vmem:[%s537_s3] ss:$0 sm:$0xff]  ;;  %s253_s3 = sshll.u32 %s435_s1, 4  ;;  %s254_s3 = int_to_ptr.vmem [resolvable:$true] %s253_s3 }
  0x3d   :  { %v265_v22 = vld [vmem:[%s539_s5] ss:$0 sm:$0xff]  ;;  %s399_s5 = scalar_lea.vmem %s254_s3, 32  ;;  %p404_p11 = scmp.lt.s32.totalorder %s254_s3, %s254_s3 }
  0x3e   :  { %316 = vmatpush3.bf16.msra.mxu1 %v315_v12  ;;  %p400_p10 = scmp.ne.s32.totalorder %s254_s3, %s399_s5  ;;  %p405_p12 = scmp.lt.s32.totalorder %s399_s5, %s399_s5 }
  0x3f   :  { %310 = vmatpush3.bf16.msra.mxu0 %v309_v13  ;;  %317 = vmatprep.subr.bf16.mxu1 %v432_v0 }
  0x40   :  { %p406_p13 = por %p405_p12, %p404_p11 }
  0x42   :  { %319 = vmatpush3.bf16.msra.mxu1 %v318_v16  ;;  %288 = vmatmul.mubr.msk.f32.vlgmr.msra.gmra.mrb[0].mxu0 %vm76_vm1, %v63_v17  ;;  %p407_p0 = pnand %p406_p13, %p400_p10 }
  0x45   :  { %303 = vmatmul.mubr.msk.f32.vlgmr.msra.gmra.mrb[0].mxu1 %vm163_vm2, %v64_v18 }
 0x115   :  { %v146_v20 = vpop.f32.mrb[0].mxu0 }
 0x116   :  { %v289_v21 = vpop.f32.mrb[1].mxu0  ;;  %v147_v23 = vadd.f32 %v263_v19, %v146_v20 }
 0x118   :  { %v233_v24 = vpop.f32.mrb[0].mxu1 }
 0x119   :  { %v234_v25 = vadd.f32 %v265_v22, %v233_v24  ;;  %v304_v26 = vpop.f32.mrb[1].mxu1 }
 0x11b   :  { %v237_v27 = vadd.f32 %v234_v25, %v147_v23  ;;  %v243_v28 = vsub.f32 %v147_v23, %v234_v25 }
 0x11d   :  { %v238_v29 = vsub.f32 0.0, %v237_v27 }
 0x11f   :  { %v239_v30 = vmul.f32 1.442695, %v238_v29 }
 0x121   :  { %329 = vpow2.f32 %v239_v30 }
 0x12b   :  { %v330_v31 = vpop.eup %329 }
 0x12c   :  { %v241_v32 = vadd.f32 1.0, %v330_v31 }
 0x12e   :  { %331 = vrcp.f32 %v241_v32 }
 0x138   :  { %v332_v33 = vpop.eup %331 }
 0x139   :  { %v244_v34 = vmul.f32 %v332_v33, %v243_v28 }
 0x13b   :  { %v245_v35 = vadd.f32 %v244_v34, %v234_v25 }
 0x13d   :  { %246 = vst [vmem:[#allocation8] sm:$0x3] %v245_v35 }
 0x13e   :  { %410 = shalt.err (!%p407_p0)
}
 0x13f   :  { %s411_s16 = scalar_lea.hbm %s540_s6, 32 }
 0x140   :  { %p412_p1 = scmp.ne.s32.totalorder %s540_s6, %s411_s16  ;;  %p415_p2 = scmp.lt.u32.totalorder %s411_s16, %s540_s6 }
 0x142   :  { %p417_p3 = pnand %p415_p2, %p412_p1 }
 0x144   :  { %420 = shalt.err (!%p417_p3)
}
 0x145   :  { %256 = dma.vmem_to_hbm [thread:$0]  %s254_s3, 32, %s540_s6, [#allocation4]  }
 0x146   :  { %425 = dma.done.wait [#allocation4], 32  }
 0x147   :  { %426 = vsyncadd [#allocation4], 4294967264 }
 0x148   :  { %260 = vsyncpa [#allocation3], 1 }
 0x149   :  { %261 = vsyncpa [#allocation6], 1 }
 0x14a   :  { %262 = vsyncpa [#allocation4], 1 }

// kernel: tpu_custom_call.1
= control target key start
LH: loop header
LB: loop body
LE: loop exit
PB: predicated region body
PF: predicated region fallthrough
CT: control target
= control target key end

     0   :  { %11 = vsyncpa [#allocation3], 0  ;;  %s534_s0 = inlined_call_operand.hbm [shape: f32[2,32], index: 0, kind: input, shape index: {}]   ;;  %s535_s1 = inlined_call_operand.vmem [shape: f32[2,48], index: 1, kind: input, shape index: {}]   ;;  %s536_s2 = inlined_call_operand.hbm [shape: f32[32,128], index: 2, kind: input, shape index: {}]   ;;  %s537_s3 = inlined_call_operand.vmem [shape: f32[1,128], index: 3, kind: input, shape index: {}]   ;;  %s538_s4 = inlined_call_operand.hbm [shape: f32[48,128], index: 4, kind: input, shape index: {}]   ;;  %s539_s5 = inlined_call_operand.vmem [shape: f32[1,128], index: 5, kind: input, shape index: {}]   ;;  %s540_s6 = inlined_call_operand.hbm [shape: f32[2,128], index: 6, kind: output, shape index: {}]  }
   0x1   :  { %12 = vsyncpa [#allocation6], 0 }
   0x2   :  { %13 = vsyncpa [#allocation4], 0  ;;  %s427_s21 = smov [#allocation5]   ;;  %s333_s25 = scalar_lea.hbm %s536_s2, 512 }
   0x3   :  { %s31_s22 = sshll.u32 %s427_s21, 4  ;;  %p334_p0 = scmp.ne.s32.totalorder %s536_s2, %s333_s25  ;;  %s32_s22 = int_to_ptr.vmem [resolvable:$true] %s31_s22 }
   0x4   :  { %p337_p1 = scmp.lt.u32.totalorder %s333_s25, %s536_s2 }
   0x6   :  { %p339_p2 = pnand %p337_p1, %p334_p0 }
   0x8   :  { %342 = shalt.err (!%p339_p2)
}
   0x9   :  { %s343_s30 = scalar_lea.vmem %s32_s22, 512  ;;  %p348_p4 = scmp.lt.s32.totalorder %s32_s22, %s32_s22 }
   0xa   :  { %p344_p3 = scmp.ne.s32.totalorder %s32_s22, %s343_s30  ;;  %p349_p5 = scmp.lt.s32.totalorder %s343_s30, %s343_s30 }
   0xc   :  { %p350_p6 = por %p349_p5, %p348_p4 }
   0xe   :  { %p351_p7 = pnand %p350_p6, %p344_p3 }
  0x10   :  { %354 = shalt.err (!%p351_p7)
}
  0x11   :  { %s428_s7 = smov 128   ;;  %s429_s8 = smov 8  }
  0x12   :  { %37 = dma.hbm_to_vmem [thread:$0]  %s536_s2, 512, %s32_s22, [#allocation6], %s428_s7, %s428_s7, %s429_s8  }
  0x13   :  { %s430_s11 = smov [#allocation2]   ;;  %s431_s13 = smov [#allocation7]  }
  0x14   :  { %s20_s12 = sshll.u32 %s430_s11, 4  ;;  %s45_s14 = sshll.u32 %s431_s13, 4  ;;  %s21_s12 = int_to_ptr.vmem [resolvable:$true] %s20_s12  ;;  %s46_s14 = int_to_ptr.vmem [resolvable:$true] %s45_s14 }
  0x15   :  { %s355_s17 = scalar_lea.hbm %s534_s0, 32 }
  0x16   :  { %p356_p8 = scmp.ne.s32.totalorder %s534_s0, %s355_s17  ;;  %p359_p9 = scmp.lt.u32.totalorder %s355_s17, %s534_s0 }
  0x18   :  { %p361_p10 = pnand %p359_p9, %p356_p8 }
  0x1a   :  { %364 = shalt.err (!%p361_p10)
}
  0x1b   :  { %s365_s2 = scalar_lea.vmem %s21_s12, 32  ;;  %p370_p12 = scmp.lt.s32.totalorder %s21_s12, %s21_s12 }
  0x1c   :  { %p366_p11 = scmp.ne.s32.totalorder %s21_s12, %s365_s2  ;;  %p371_p13 = scmp.lt.s32.totalorder %s365_s2, %s365_s2 }
  0x1e   :  { %p372_p0 = por %p371_p13, %p370_p12 }
  0x20   :  { %p373_p1 = pnand %p372_p0, %p366_p11 }
  0x22   :  { %376 = shalt.err (!%p373_p1)
}
  0x23   :  { %23 = dma.hbm_to_vmem [thread:$0]  %s534_s0, 32, %s21_s12, [#allocation3]  }
  0x24   :  { %s377_s26 = scalar_lea.hbm %s538_s4, 768 }
  0x25   :  { %p378_p2 = scmp.ne.s32.totalorder %s538_s4, %s377_s26  ;;  %p381_p3 = scmp.lt.u32.totalorder %s377_s26, %s538_s4 }
  0x27   :  { %p383_p4 = pnand %p381_p3, %p378_p2 }
  0x29   :  { %386 = shalt.err (!%p383_p4)
}
  0x2a   :  { %s387_s9 = scalar_lea.vmem %s46_s14, 768  ;;  %p392_p6 = scmp.lt.s32.totalorder %s46_s14, %s46_s14 }
  0x2b   :  { %p388_p5 = scmp.ne.s32.totalorder %s46_s14, %s387_s9  ;;  %p393_p7 = scmp.lt.s32.totalorder %s387_s9, %s387_s9 }
  0x2d   :  { %p394_p8 = por %p393_p7, %p392_p6 }
  0x2f   :  { %p395_p9 = pnand %p394_p8, %p388_p5 }
  0x31   :  { %398 = shalt.err (!%p395_p9)
}
  0x32   :  { %51 = dma.hbm_to_vmem [thread:$0]  %s538_s4, 768, %s46_s14, [#allocation6], %s428_s7, %s428_s7, %s429_s8  }
  0x33   :  { %421 = dma.done.wait [#allocation3], 32  }
  0x34   :  { %422 = vsyncadd [#allocation3], 4294967264 }
  0x35   :  { %423 = dma.done.wait [#allocation6], 1280  }
  0x36   :  { %424 = vsyncadd [#allocation6], 4294966016  ;;  %v432_v0 = vmov 0.0|0.0   ;;  %vm433_vm0 = vmmov 0   ;;  %v434_v1 = vmov 0.0   ;;  %v150_v2 = vld [vmem:[#allocation7] sm:$0xff] }
  0x37   :  { %311 = vmatprep.subr.bf16.mxu1 %v432_v0  ;;  %305 = vmatprep.subr.bf16.mxu0 %v432_v0  ;;  %v151_v3 = vld [vmem:[#allocation7 + $0x8] sm:$0xff]  ;;  %v65_v4 = vld [vmem:[#allocation5] sm:$0xff]  ;;  %v152_v7 = vld [vmem:[#allocation7 + $0x10] sm:$0xff]  ;;  %vm76_vm1 = vcmask 261120   ;;  %vm163_vm2 = vcmask 392192  }
  0x38   :  { %287 = vmatprep.mubr.msk.f32.mxu0 %vm433_vm0, %v434_v1  ;;  %302 = vmatprep.mubr.msk.f32.mxu1 %vm433_vm0, %v434_v1  ;;  %v312_v5 = vpack.c.bf16 %v151_v3, %v150_v2  ;;  %v66_v6 = vld [vmem:[#allocation5 + $0x8] sm:$0xff]  ;;  %v153_v8 = vld [vmem:[#allocation7 + $0x18] sm:$0xff]  ;;  %v67_v10 = vld [vmem:[#allocation5 + $0x10] sm:$0xff] }
  0x39   :  { %v306_v9 = vpack.c.bf16 %v66_v6, %v65_v4  ;;  %v68_v11 = vld [vmem:[#allocation5 + $0x18] sm:$0xff]  ;;  %v315_v12 = vpack.c.bf16 %v153_v8, %v152_v7  ;;  %v154_v14 = vld [vmem:[#allocation7 + $0x20] sm:$0xff]  ;;  %v155_v15 = vld [vmem:[#allocation7 + $0x28] sm:$0xff] }
  0x3a   :  { %313 = vmatpush3.bf16.msra.mxu1 %v312_v5  ;;  %v309_v13 = vpack.c.bf16 %v68_v11, %v67_v10  ;;  %v318_v16 = vpack.c.bf16 %v155_v15, %v154_v14  ;;  %v63_v17 = vld [vmem:[#allocation2] sm:$0x3] }
  0x3b   :  { %307 = vmatpush3.bf16.msra.mxu0 %v306_v9  ;;  %314 = vmatprep.subr.bf16.mxu1 %v432_v0  ;;  %v64_v18 = vld [vmem:[%s535_s1] sm:$0x3]  ;;  %s435_s1 = smov [#allocation8]  }
  0x3c   :  { %308 = vmatprep.subr.bf16.mxu0 %v432_v0  ;;  %v263_v19 = vld [vmem:[%s537_s3] ss:$0 sm:$0xff]  ;;  %s253_s3 = sshll.u32 %s435_s1, 4  ;;  %s254_s3 = int_to_ptr.vmem [resolvable:$true] %s253_s3 }
  0x3d   :  { %v265_v22 = vld [vmem:[%s539_s5] ss:$0 sm:$0xff]  ;;  %s399_s5 = scalar_lea.vmem %s254_s3, 32  ;;  %p404_p11 = scmp.lt.s32.totalorder %s254_s3, %s254_s3 }
  0x3e   :  { %316 = vmatpush3.bf16.msra.mxu1 %v315_v12  ;;  %p400_p10 = scmp.ne.s32.totalorder %s254_s3, %s399_s5  ;;  %p405_p12 = scmp.lt.s32.totalorder %s399_s5, %s399_s5 }
  0x3f   :  { %310 = vmatpush3.bf16.msra.mxu0 %v309_v13  ;;  %317 = vmatprep.subr.bf16.mxu1 %v432_v0 }
  0x40   :  { %p406_p13 = por %p405_p12, %p404_p11 }
  0x42   :  { %319 = vmatpush3.bf16.msra.mxu1 %v318_v16  ;;  %288 = vmatmul.mubr.msk.f32.vlgmr.msra.gmra.mrb[0].mxu0 %vm76_vm1, %v63_v17  ;;  %p407_p0 = pnand %p406_p13, %p400_p10 }
  0x45   :  { %303 = vmatmul.mubr.msk.f32.vlgmr.msra.gmra.mrb[0].mxu1 %vm163_vm2, %v64_v18 }
 0x115   :  { %v146_v20 = vpop.f32.mrb[0].mxu0 }
 0x116   :  { %v289_v21 = vpop.f32.mrb[1].mxu0  ;;  %v147_v23 = vadd.f32 %v263_v19, %v146_v20 }
 0x118   :  { %v233_v24 = vpop.f32.mrb[0].mxu1 }
 0x119   :  { %v234_v25 = vadd.f32 %v265_v22, %v233_v24  ;;  %v304_v26 = vpop.f32.mrb[1].mxu1 }
 0x11b   :  { %v237_v27 = vadd.f32 %v234_v25, %v147_v23  ;;  %v243_v28 = vsub.f32 %v147_v23, %v234_v25 }
 0x11d   :  { %v238_v29 = vsub.f32 0.0, %v237_v27 }
 0x11f   :  { %v239_v30 = vmul.f32 1.442695, %v238_v29 }
 0x121   :  { %329 = vpow2.f32 %v239_v30 }
 0x12b   :  { %v330_v31 = vpop.eup %329 }
 0x12c   :  { %v241_v32 = vadd.f32 1.0, %v330_v31 }
 0x12e   :  { %331 = vrcp.f32 %v241_v32 }
 0x138   :  { %v332_v33 = vpop.eup %331 }
 0x139   :  { %v244_v34 = vmul.f32 %v332_v33, %v243_v28 }
 0x13b   :  { %v245_v35 = vadd.f32 %v244_v34, %v234_v25 }
 0x13d   :  { %246 = vst [vmem:[#allocation8] sm:$0x3] %v245_v35 }
 0x13e   :  { %410 = shalt.err (!%p407_p0)
}
 0x13f   :  { %s411_s16 = scalar_lea.hbm %s540_s6, 32 }
 0x140   :  { %p412_p1 = scmp.ne.s32.totalorder %s540_s6, %s411_s16  ;;  %p415_p2 = scmp.lt.u32.totalorder %s411_s16, %s540_s6 }
 0x142   :  { %p417_p3 = pnand %p415_p2, %p412_p1 }
 0x144   :  { %420 = shalt.err (!%p417_p3)
}
 0x145   :  { %256 = dma.vmem_to_hbm [thread:$0]  %s254_s3, 32, %s540_s6, [#allocation4]  }
 0x146   :  { %425 = dma.done.wait [#allocation4], 32  }
 0x147   :  { %426 = vsyncadd [#allocation4], 4294967264 }
 0x148   :  { %260 = vsyncpa [#allocation3], 1 }
 0x149   :  { %261 = vsyncpa [#allocation6], 1 }
 0x14a   :  { %262 = vsyncpa [#allocation4], 1 }

</bundles_post_ra>
